<compile_context>
chip_gen: v7x
topology: tpu7x:2x2x1
jax: 0.10.0
libtpu: 0.0.40
codegen_flags: <defaults>
</compile_context>

<pallas_src>
import functools
import numpy as np

import jax
import jax.numpy as jnp
from jax.experimental import pallas as pl
from jax.experimental.pallas import tpu as pltpu

_LANE = 128
_SUBLANE = 8
_TARGET_BLOCK_BYTES = 4 * 1024 * 1024   # ~4 MiB per x block
_MAX_BATCH_TILE = 64                    # multiple of 8 (and 16 for bf16 sublane packing)
_VMEM_LIMIT_BYTES = 32 * 1024 * 1024    # safe on v5e/v6e (128 MiB phys) and v7x (64 MiB phys)
_SMALL_TOTAL_FALLBACK = 2 * _LANE       # lane-sparse features -> plain XLA elementwise


def _cdiv(a, b):
    return -(-a // b)


def _round_up(n, m):
    return _cdiv(n, m) * m


def _drop_path_kernel(scale_ref, x_ref, o_ref):
    # scale_ref: (bb, 1) per-sample scale, already in x.dtype (stays resident
    # across the feature grid axis).  x_ref / o_ref: (bb, bf) lane-dense tiles.
    o_ref[...] = x_ref[...] * scale_ref[...]


def _choose_tiles(B, total, itemsize):
    """Byte-targeted tile sizing: ~_TARGET_BLOCK_BYTES per x block."""
    # Batch tile: full B, or a multiple of 8 (ragged last tile masked by Pallas).
    bb = B if B <= _MAX_BATCH_TILE else _MAX_BATCH_TILE
    bf_cap = _round_up(total, _LANE)
    bf = max(_LANE, (_TARGET_BLOCK_BYTES // (bb * itemsize)) // _LANE * _LANE)
    bf = min(bf, bf_cap)
    # Keep >= 2 blocks along one "parallel" axis so v7x megacore can shard the grid.
    if _cdiv(B, bb) == 1 and _cdiv(total, bf) == 1 and total >= 2 * _LANE:
        bf = _round_up(_cdiv(total, 2), _LANE)
    return bb, bf


@functools.partial(jax.jit, static_argnames=("drop_prob",))
def _drop_path_train(x, key, *, drop_prob):
    keep_prob = 1.0 - drop_prob
    B = x.shape[0]
    total = int(np.prod(x.shape[1:]))

    # Per-sample Bernoulli(keep_prob) scale: floor(keep_prob + U[0,1)) / keep_prob.
    # Tiny scalar work; done once here, outside the kernel.
    u = jax.random.uniform(key, (B, 1), dtype=jnp.float32)
    mask = jnp.floor(jnp.float32(keep_prob) + u)                    # 0.0 or 1.0
    scale = (mask * jnp.float32(1.0 / keep_prob)).astype(x.dtype)   # pre-cast once

    # Small / lane-sparse inputs: fused XLA elementwise beats a kernel launch
    # full of masked partial stores.
    if total < _SMALL_TOTAL_FALLBACK:
        return x * scale.reshape((B,) + (1,) * (x.ndim - 1))

    x2 = x.reshape(B, total)   # free view, no padding: exactly 1 HBM read + 1 write
    bb, bf = _choose_tiles(B, total, x.dtype.itemsize)

    out2 = pl.pallas_call(
        _drop_path_kernel,
        out_shape=jax.ShapeDtypeStruct((B, total), x.dtype),
        grid=(_cdiv(B, bb), _cdiv(total, bf)),
        in_specs=[
            pl.BlockSpec((bb, 1), lambda i, j: (i, 0)),    # per-sample scale
            pl.BlockSpec((bb, bf), lambda i, j: (i, j)),   # x tile
        ],
        out_specs=pl.BlockSpec((bb, bf), lambda i, j: (i, j)),
        compiler_params=pltpu.CompilerParams(
            dimension_semantics=("parallel", "parallel"),
            vmem_limit_bytes=_VMEM_LIMIT_BYTES,
        ),
    )(scale, x2)

    return out2.reshape(x.shape)


def drop_path(x, drop_prob: float = 0.0, training: bool = False, key=None):
    """Pallas implementation of fairseq's drop_path (stochastic depth)."""
    if drop_prob == 0.0 or not training:
        return x  # identity path — no kernel launch
    if drop_prob >= 1.0:
        # PyTorch reference would produce NaN here (x/0 * 0); "drop everything"
        # is the intended behaviour, so return zeros.
        return jnp.zeros_like(x)
    if key is None:
        raise ValueError(
            "drop_path(training=True, drop_prob>0) needs an explicit PRNG `key`; "
            "a fixed default key would reuse the same drop mask every call.")
    return _drop_path_train(x, key, drop_prob=float(drop_prob))


class DropPath:
    """Drop paths (Stochastic Depth) per sample, Pallas-backed."""

    def __init__(self, drop_prob=None):
        self.drop_prob = drop_prob
        self.training = True

    def __call__(self, x, key=None):
        return drop_path(x, self.drop_prob, self.training, key=key)


def _check_valid_drop_path(x_np, y_np, keep_prob, rtol=1e-5, atol=1e-5):
    for b in range(x_np.shape[0]):
        zero_ok = np.allclose(y_np[b], 0.0, atol=atol)
        scaled_ok = np.allclose(y_np[b], x_np[b] / keep_prob, rtol=rtol, atol=atol)
        assert zero_ok or scaled_ok, f"sample {b}: not a valid drop-path output"


if __name__ == "__main__":
    key = jax.random.PRNGKey(0)
    k_x, k_x2, k_x3, k_drop, k_drop2 = jax.random.split(key, 5)

    # NCHW-like input, consistent with the conv feature maps this layer wraps.
    x = jax.random.normal(k_x, (2, 4, 16, 16), dtype=jnp.float32)

    # training path (drop_prob > 0): per-sample drop + rescale (Pallas kernel)
    mod = DropPath(drop_prob=0.5)
    mod.training = True
    y = jax.block_until_ready(mod(x, key=k_drop))
    _check_valid_drop_path(np.asarray(x), np.asarray(y), keep_prob=0.5)

    # batch-heavy bf16 shape: exercises the 64-row batch tile + feature split
    x_b = jax.random.normal(k_x3, (64, 4096), dtype=jnp.bfloat16)
    y_b = jax.block_until_ready(drop_path(x_b, 0.25, True, key=k_drop2))
    _check_valid_drop_path(np.asarray(x_b, dtype=np.float32),
                           np.asarray(y_b, dtype=np.float32),
                           keep_prob=0.75, rtol=2e-2, atol=2e-2)

    # ragged, lane-sparse feature count (total = 35): jnp fallback path
    x_r = jax.random.normal(k_x2, (3, 5, 7), dtype=jnp.float32)
    y_r = jax.block_until_ready(drop_path(x_r, 0.3, True, key=k_drop))
    _check_valid_drop_path(np.asarray(x_r), np.asarray(y_r), keep_prob=0.7)

    # eval path: identity
    mod.training = False
    y_eval = jax.block_until_ready(mod(x))
    assert np.allclose(np.asarray(y_eval), np.asarray(x))

    # drop_prob == 0: identity even in training
    mod0 = DropPath(drop_prob=0.0)
    mod0.training = True
    y0 = jax.block_until_ready(mod0(x))
    assert np.allclose(np.asarray(y0), np.asarray(x))

    # drop_prob == 1: everything dropped
    y1 = jax.block_until_ready(drop_path(x, 1.0, True, key=k_drop))
    assert np.allclose(np.asarray(y1), 0.0)

    print("KERNEL_OK")
</pallas_src>

<mosaic_0001>
module attributes {stable_mosaic.version = 11 : i64} {
  func.func @_drop_path_kernel(%arg0: i32, %arg1: i32, %arg2: memref<2x1xf32, #tpu.memory_space<vmem>>, %arg3: memref<2x512xf32, #tpu.memory_space<vmem>>, %arg4: memref<2x512xf32, #tpu.memory_space<vmem>>) attributes {dimension_semantics = [#tpu.dimension_semantics<parallel>, #tpu.dimension_semantics<parallel>], iteration_bounds = array<i64: 1, 2>, scalar_prefetch = 0 : i64, scratch_operands = 0 : i64, tpu.core_type = #tpu.core_type<tc>, window_params = [{transform_indices = @transform_0, window_bounds = array<i64: 2, 1>}, {transform_indices = @transform_1, window_bounds = array<i64: 2, 512>}, {transform_indices = @transform_2, window_bounds = array<i64: 2, 512>}]} {
    %c0 = arith.constant 0 : index
    %c0_0 = arith.constant 0 : index
    %0 = vector.load %arg3[%c0, %c0_0] : memref<2x512xf32, #tpu.memory_space<vmem>>, vector<2x512xf32>
    %c0_1 = arith.constant 0 : index
    %c0_2 = arith.constant 0 : index
    %1 = vector.load %arg2[%c0_1, %c0_2] : memref<2x1xf32, #tpu.memory_space<vmem>>, vector<2x1xf32>
    %2 = vector.broadcast %1 : vector<2x1xf32> to vector<2x512xf32>
    %3 = arith.mulf %0, %2 : vector<2x512xf32>
    %c0_3 = arith.constant 0 : index
    %c0_4 = arith.constant 0 : index
    %4 = vector.load %arg4[%c0_3, %c0_4] : memref<2x512xf32, #tpu.memory_space<vmem>>, vector<2x512xf32>
    tpu.vector_store %arg4[%c0_3, %c0_4], %3 {strides = array<i32>} : memref<2x512xf32, #tpu.memory_space<vmem>>, vector<2x512xf32>,
    return
  }
  func.func @transform_0(%arg0: i32, %arg1: i32) -> (i32, i32) {
    %c0_i32 = arith.constant 0 : i32
    %c0_i32_0 = arith.constant 0 : i32
    return %arg0, %c0_i32 : i32, i32
  }
  func.func @transform_1(%arg0: i32, %arg1: i32) -> (i32, i32) {
    %c0_i32 = arith.constant 0 : i32
    return %arg0, %arg1 : i32, i32
  }
  func.func @transform_2(%arg0: i32, %arg1: i32) -> (i32, i32) {
    %c0_i32 = arith.constant 0 : i32
    return %arg0, %arg1 : i32, i32
  }
}

</mosaic_0001>

<bundles_post_ra>
// kernel: _drop_path_train.1
= control target key start
LH: loop header
LB: loop body
LE: loop exit
PB: predicated region body
PF: predicated region fallthrough
CT: control target
= control target key end

     0   :  { %s398_s9 = smov 0   ;;  %s400_s10 = smov 0   ;;  %s431_s0 = inlined_call_operand.vmem [shape: f32[2,1], index: 0, kind: input, shape index: {}]   ;;  %s432_s1 = inlined_call_operand.vmem [shape: f32[2,1024], index: 1, kind: input, shape index: {}]   ;;  %s433_s2 = inlined_call_operand.vmem [shape: f32[2,1024], index: 2, kind: output, shape index: {}]  }
   0x1   :  { %s402_s11 = smov 0  }
   0x2 LB: > { %s21_s12 = sadd.s32 1, %s375_s10  ;;  %p323_p0 = scmp.ge.s32.totalorder %s379_s11, 1  ;;  %s379_s11 = sphi %s402_s11, %s12_s11   ;;  %s375_s10 = sphi %s400_s10, %s435_s10   ;;  %s371_s9 = sphi %s398_s9, %s434_s9  }
   0x3   : > { %p22_p1 = scmp.ge.s32.totalorder %s21_s12, 2  ;;  %p142_p2 = scmp.lt.s32.totalorder %s379_s11, 3 }
   0x5   : > { %s437_s12 = smov (%p22_p1, %s21_s12), 0  ;;  %p143_p3 = pnand %p323_p0, %p142_p2 }
   0x6   : > { %v201_v0 = vld [vmem:[%s431_s0] sm:$0x3] (!%p143_p3)  ;;  %v381_v1 = vmov (!%p143_p3), 0   ;;  %s324_s15 = sshll.u32 (!%p143_p3), %s371_s9, 2  ;;  %v382_v2 = vmov (!%p143_p3), 269488144   ;;  %v209_v4 = vlaneseq (!%p143_p3) }
   0x7   : > { %146 = sbr.rel (%p143_p3) target bundleno = 141 (0x8d), region = 28  ;;  %356 = vset.pattern.permute.xlu0 (!%p143_p3), %v381_v1  ;;  %p183_p4 = scmp.lt.s32.totalorder (!%p143_p3), %s324_s15, 7  ;;  %v207_v3 = vunpack.c.l.s4 (!%p143_p3), %v382_v2 }
   0x8   : > { %204 = vperm.xlu0 (!%p143_p3), %356, %v201_v0   ;;  %v210_v6 = vshrl.u32 (!%p143_p3), %v209_v4, 7 }
   0x9   : > { %v208_v5 = vunpack.c.0.s8 (!%p143_p3), %v207_v3 }
   0xb   : > { %v211_v7 = vsub.s32 (!%p143_p3), %v208_v5, %v210_v6 }
   0xe   : > { %s439_s15 = smov (!%p183_p4, %s324_s15), 7 }
   0xf   : > { %s325_s16 = sshll.u32 %s439_s15, 1 }
  0x10   : > { %s188_s19 = scalar_lea.vmem %s432_s1, %s325_s16  ;;  %s198_s22 = scalar_lea.vmem %s433_s2, %s325_s16 }
  0x11   : > { %v200_v9 = vld [vmem:[%s188_s19] sm:$0xff] }
  0x87   : > { %v205_v8 = vpop.permute.xlu0 %204 }
  0x88   : > { %v212_v10 = vrot.slane %v205_v8, %v211_v7 }
  0x8a   : > { %v214_v11 = vmul.f32 %v212_v10, %v200_v9 }
  0x8c   : > { %215 = vst [vmem:[%s198_s22] sm:$0xff] %v214_v11 }
  0x8d PF: > { %s12_s11 = sadd.s32 1, %s379_s11   ;;  %s434_s9 = smov %s375_s10 }
  0x8e   : > { %p9_p5 = scmp.ge.s32.totalorder %s12_s11, 4   ;;  %s435_s10 = smov %s437_s12 }
  0x90   :  { %11 = sbr.rel (!%p9_p5) target bundleno = 2 (0x2), region = 61 }

</bundles_post_ra>
